<compile_context>
chip_gen: v7x
topology: tpu7x:2x2x1
jax: 0.10.0
libtpu: 0.0.40
codegen_flags: <defaults>
</compile_context>

<pallas_src>
import jax
import jax.numpy as jnp
from jax.experimental import pallas as pl
from jax.experimental.pallas import tpu as pltpu


def _proj_softmax_kernel(x_ref, w_ref, b_ref, o_ref, logits_sc):
    # x_ref:  [BP, E]   last-token activations (resident across the grid)
    # w_ref:  [TV, E]   one vocab tile of the [V, E] weight (streamed)
    # b_ref:  [1, TV]   bias tile
    # o_ref:  [BP, V]   resident output, written once on the last step
    # logits_sc: [BP, V] f32 scratch accumulator
    j = pl.program_id(0)
    tv = w_ref.shape[0]

    # [BP, E] x [TV, E] -> [BP, TV], contracting on E (weight kept in [V, E] layout).
    tile = jnp.einsum(
        "be,ve->bv", x_ref[...], w_ref[...],
        preferred_element_type=jnp.float32,
    ) + b_ref[...].astype(jnp.float32)

    if tv == logits_sc.shape[1]:
        # Single-tile (degenerate) case.
        logits_sc[...] = tile
    else:
        off = pl.multiple_of(j * tv, tv)
        logits_sc[:, pl.ds(off, tv)] = tile

    @pl.when(j == pl.num_programs(0) - 1)
    def _finalize():
        logits = logits_sc[...]
        m = jnp.max(logits, axis=-1, keepdims=True)
        e = jnp.exp(logits - m)
        denom = jnp.sum(e, axis=-1, keepdims=True)
        inv = pl.reciprocal(denom, approx=True)     # EUP slot (otherwise idle)
        inv = inv * (2.0 - denom * inv)             # one Newton step -> full f32 accuracy
        o_ref[...] = (e * inv).astype(o_ref.dtype)


def _pick_vocab_tile(v, e, w_itemsize, budget_bytes=8 << 20):
    """Largest vocab tile that divides V, is a multiple of 128, and keeps the
    double-buffered weight tile under `budget_bytes` (safe under the default
    scoped-VMEM limit on v5e/v6e/v7x).  Falls back to a single full-V tile."""
    for cand in (8192, 4096, 2048, 1024, 512, 256, 128):
        if v % cand == 0 and 2 * cand * e * w_itemsize <= budget_bytes:
            return cand
    return v


def output_probability_projection(embedding, weight, bias, *, vocab_tile=None):
    """embedding: [B, S, E]; weight: [V, E] (PyTorch nn.Linear layout); bias: [V]."""
    b, s, e = embedding.shape
    v, e_w = weight.shape
    assert e_w == e

    # Last-token select (tiny: B*E elements) + pad batch rows to a sublane multiple.
    x_last = embedding[:, -1, :]                      # [B, E], keep caller dtype
    bp = ((b + 7) // 8) * 8
    if bp != b:
        x_last = jnp.pad(x_last, ((0, bp - b), (0, 0)))
    b2d = bias.reshape(1, v)

    tv = vocab_tile or _pick_vocab_tile(v, e, weight.dtype.itemsize)
    if v % tv != 0:
        tv = v
    grid = (v // tv,)

    cost = pl.CostEstimate(
        flops=2 * bp * e * v,
        transcendentals=bp * v,
        bytes_accessed=(v * e * weight.dtype.itemsize
                        + bp * e * x_last.dtype.itemsize
                        + v * bias.dtype.itemsize
                        + bp * v * 4),
    )

    out = pl.pallas_call(
        _proj_softmax_kernel,
        out_shape=jax.ShapeDtypeStruct((bp, v), jnp.float32),
        grid_spec=pltpu.PrefetchScalarGridSpec(
            num_scalar_prefetch=0,
            grid=grid,
            in_specs=[
                pl.BlockSpec((bp, e), lambda j: (0, 0)),   # x: resident
                pl.BlockSpec((tv, e), lambda j: (j, 0)),   # weight tile (streamed, 2x buffered)
                pl.BlockSpec((1, tv), lambda j: (0, j)),   # bias tile
            ],
            out_specs=pl.BlockSpec((bp, v), lambda j: (0, 0)),  # resident output
            scratch_shapes=[pltpu.VMEM((bp, v), jnp.float32)],  # logits accumulator
        ),
        # Resident accumulator/output across the vocab axis -> "arbitrary".
        # TODO(synk): on v7x, shard V across the two TensorCores (per-core
        # partial max/sum + tiny finalize) instead of one "arbitrary" axis.
        compiler_params=pltpu.CompilerParams(dimension_semantics=("arbitrary",)),
        cost_estimate=cost,
    )(x_last, weight, b2d)

    probs = out[:b]
    if b == 1:
        probs = probs[0]   # match PyTorch `.squeeze()` for batch size 1
    return probs


if __name__ == "__main__":
    # Small, lane/sublane-friendly shapes consistent with the module's forward.
    B, S, E, V = 2, 8, 128, 1024

    key = jax.random.PRNGKey(0)
    k_emb, k_w, k_b = jax.random.split(key, 3)

    embedding = jax.random.normal(k_emb, (B, S, E), dtype=jnp.float32)
    # PyTorch nn.Linear parameter shapes: W [V, E], b [V].
    weight = jax.random.normal(k_w, (V, E), dtype=jnp.float32) * 0.05
    bias = jax.random.normal(k_b, (V,), dtype=jnp.float32) * 0.05

    # vocab_tile=256 -> grid=(4,) so the tiled / pipelined path is exercised.
    probs = output_probability_projection(embedding, weight, bias, vocab_tile=256)
    probs = jax.block_until_ready(probs)

    # Reference in plain JAX (matmul at highest precision for a clean baseline).
    logits_ref = jnp.einsum("be,ve->bv", embedding[:, -1, :], weight,
                            precision=jax.lax.Precision.HIGHEST) + bias
    ref = jax.nn.softmax(logits_ref, axis=-1)

    assert probs.shape == (B, V)
    assert jnp.allclose(probs, ref, atol=5e-5, rtol=1e-4), \
        float(jnp.max(jnp.abs(probs - ref)))
    assert jnp.allclose(jnp.sum(probs, axis=-1), 1.0, atol=1e-5)

    print("KERNEL_OK")
</pallas_src>

<mosaic_0001>
module attributes {stable_mosaic.version = 11 : i64} {
  func.func @_proj_softmax_kernel(%arg0: i32, %arg1: memref<8x128xf32, #tpu.memory_space<vmem>>, %arg2: memref<256x128xf32, #tpu.memory_space<vmem>>, %arg3: memref<1x256xf32, #tpu.memory_space<vmem>>, %arg4: memref<8x1024xf32, #tpu.memory_space<vmem>>, %arg5: memref<8x1024xf32, #tpu.memory_space<vmem>>) attributes {dimension_semantics = [#tpu.dimension_semantics<arbitrary>], iteration_bounds = array<i64: 4>, scalar_prefetch = 0 : i64, scratch_operands = 1 : i64, tpu.core_type = #tpu.core_type<tc>, window_params = [{pipeline_mode = #tpu.pipeline_mode<synchronous>, transform_indices = @transform_0, window_bounds = array<i64: 8, 128>}, {transform_indices = @transform_1, window_bounds = array<i64: 256, 128>}, {transform_indices = @transform_2, window_bounds = array<i64: 1, 256>}, {pipeline_mode = #tpu.pipeline_mode<synchronous>, transform_indices = @transform_3, window_bounds = array<i64: 8, 1024>}]} {
    %c0 = arith.constant 0 : index
    %c0_0 = arith.constant 0 : index
    %0 = vector.load %arg1[%c0, %c0_0] : memref<8x128xf32, #tpu.memory_space<vmem>>, vector<8x128xf32>
    %c0_1 = arith.constant 0 : index
    %c0_2 = arith.constant 0 : index
    %1 = vector.load %arg2[%c0_1, %c0_2] : memref<256x128xf32, #tpu.memory_space<vmem>>, vector<256x128xf32>
    "tpu.trace_start"() <{level = 10 : i32, message = "be,ve->bv"}> : () -> ()
    %cst = arith.constant dense<0.000000e+00> : vector<8x256xf32>
    %2 = tpu.matmul %0, %1, %cst {dimension_numbers = #tpu.dot_dimension_numbers<[1], [1], [0], [0], [0, 0, 1, 0], [], []>} : vector<8x128xf32>, vector<256x128xf32>, vector<8x256xf32> -> vector<8x256xf32>
    "tpu.trace_stop"() : () -> ()
    %c0_3 = arith.constant 0 : index
    %c0_4 = arith.constant 0 : index
    %3 = vector.load %arg3[%c0_3, %c0_4] : memref<1x256xf32, #tpu.memory_space<vmem>>, vector<1x256xf32>
    %4 = vector.broadcast %3 : vector<1x256xf32> to vector<8x256xf32>
    %5 = arith.addf %2, %4 : vector<8x256xf32>
    %c256_i32 = arith.constant 256 : i32
    %6 = arith.muli %arg0, %c256_i32 : i32
    %7 = tpu.assume_multiple %6, 256 : i32
    %c0_5 = arith.constant 0 : index
    %8 = arith.index_cast %7 : i32 to index
    %9 = vector.load %arg5[%c0_5, %8] : memref<8x1024xf32, #tpu.memory_space<vmem>>, vector<8x256xf32>
    tpu.vector_store %arg5[%c0_5, %8], %5 {strides = array<i32>} : memref<8x1024xf32, #tpu.memory_space<vmem>>, vector<8x256xf32>,
    %c3_i32 = arith.constant 3 : i32
    %10 = arith.cmpi eq, %arg0, %c3_i32 : i32
    %11 = arith.extui %10 : i1 to i32
    %c0_i32 = arith.constant 0 : i32
    %12 = arith.cmpi ne, %11, %c0_i32 : i32
    scf.if %12 {
      %c0_6 = arith.constant 0 : index
      %c0_7 = arith.constant 0 : index
      %13 = vector.load %arg5[%c0_6, %c0_7] : memref<8x1024xf32, #tpu.memory_space<vmem>>, vector<8x1024xf32>
      %cst_8 = arith.constant dense<0xFF800000> : vector<8xf32>
      %14 = vector.multi_reduction <maximumf>, %13, %cst_8 [1] : vector<8x1024xf32> to vector<8xf32>
      %15 = vector.shape_cast %14 : vector<8xf32> to vector<8x1xf32>
      %16 = vector.broadcast %15 : vector<8x1xf32> to vector<8x1024xf32>
      %17 = arith.subf %13, %16 : vector<8x1024xf32>
      %18 = math.exp %17 : vector<8x1024xf32>
      %cst_9 = arith.constant dense<0.000000e+00> : vector<8xf32>
      %19 = vector.multi_reduction <add>, %18, %cst_9 [1] : vector<8x1024xf32> to vector<8xf32>
      %20 = vector.shape_cast %19 : vector<8xf32> to vector<8x1xf32>
      %21 = tpu.reciprocal %20 {approx = true} : vector<8x1xf32> -> vector<8x1xf32>
      %22 = arith.mulf %20, %21 : vector<8x1xf32>
      %cst_10 = arith.constant 2.000000e+00 : f32
      %23 = vector.broadcast %cst_10 : f32 to vector<8x1xf32>
      %24 = arith.subf %23, %22 : vector<8x1xf32>
      %25 = arith.mulf %21, %24 : vector<8x1xf32>
      %26 = vector.broadcast %25 : vector<8x1xf32> to vector<8x1024xf32>
      %27 = arith.mulf %18, %26 : vector<8x1024xf32>
      %c0_11 = arith.constant 0 : index
      %c0_12 = arith.constant 0 : index
      %28 = vector.load %arg4[%c0_11, %c0_12] : memref<8x1024xf32, #tpu.memory_space<vmem>>, vector<8x1024xf32>
      tpu.vector_store %arg4[%c0_11, %c0_12], %27 {strides = array<i32>} : memref<8x1024xf32, #tpu.memory_space<vmem>>, vector<8x1024xf32>,
    } else {
    }
    return
  }
  func.func @transform_0(%arg0: i32) -> (i32, i32) {
    %c0_i32 = arith.constant 0 : i32
    %c0_i32_0 = arith.constant 0 : i32
    %c0_i32_1 = arith.constant 0 : i32
    return %c0_i32, %c0_i32_0 : i32, i32
  }
  func.func @transform_1(%arg0: i32) -> (i32, i32) {
    %c0_i32 = arith.constant 0 : i32
    %c0_i32_0 = arith.constant 0 : i32
    return %arg0, %c0_i32 : i32, i32
  }
  func.func @transform_2(%arg0: i32) -> (i32, i32) {
    %c0_i32 = arith.constant 0 : i32
    %c0_i32_0 = arith.constant 0 : i32
    return %c0_i32, %arg0 : i32, i32
  }
  func.func @transform_3(%arg0: i32) -> (i32, i32) {
    %c0_i32 = arith.constant 0 : i32
    %c0_i32_0 = arith.constant 0 : i32
    %c0_i32_1 = arith.constant 0 : i32
    return %c0_i32, %c0_i32_0 : i32, i32
  }
}

</mosaic_0001>

<bundles_post_ra>
// kernel: tpu_custom_call.1
= control target key start
LH: loop header
LB: loop body
LE: loop exit
PB: predicated region body
PF: predicated region fallthrough
CT: control target
= control target key end

     0   :  { %8 = vsyncpa [#allocation4], 0  ;;  %s1111_s0 = inlined_call_operand.hbm [shape: f32[8,128], index: 0, kind: input, shape index: {}]   ;;  %s1112_s1 = inlined_call_operand.hbm [shape: f32[1024,128], index: 1, kind: input, shape index: {}]   ;;  %s1113_s2 = inlined_call_operand.hbm [shape: f32[1,1024], index: 2, kind: input, shape index: {}]   ;;  %s1114_s3 = inlined_call_operand.hbm [shape: f32[8,1024], index: 3, kind: output, shape index: {}]  }
   0x1   :  { %9 = vsyncpa [#allocation7], 0 }
   0x2   :  { %11 = vsyncpa [#allocation7 + $0x1], 0 }
   0x3   :  { %12 = vsyncpa [#allocation5], 0  ;;  %s870_s12 = smov 0   ;;  %s872_s13 = smov 0  }
   0x4   :  { %s874_s14 = smov 0   ;;  %s876_s15 = smov 0  }
   0x5 LB: > { %s891_s16 = sadd.s32 1, %s842_s15   ;;  %s46_s17 = sadd.s32 1, %s838_s14  ;;  %s842_s15 = sphi %s876_s15, %s1135_s15   ;;  %s838_s14 = sphi %s874_s14, %s1134_s14   ;;  %s834_s13 = sphi %s872_s13, %s1133_s13   ;;  %s830_s12 = sphi %s870_s12, %s1132_s12  }
   0x6   : > { %s43_s18 = ssub.s32 %s842_s15, %s891_s16  ;;  %p53_p0 = scmp.ne.s32.totalorder %s838_s14, %s834_s13 }
   0x7   : > { %p44_p1 = scmp.eq.s32.totalorder %s43_s18, 0  ;;  %p54_p2 = scmp.eq.s32.totalorder %s842_s15, 0 }
   0x8   : > { %p628_p3 = scmp.lt.s32.totalorder %s842_s15, 4  ;;  %s141_s20 = sand.u32 1, %s842_s15  }
   0x9   : > { %s901_s19 = scalar_select %p44_p1, %s838_s14, %s46_s17  }
   0xa   : > { %p55_p4 = por %p54_p2, %p53_p0  ;;  %s143_s21 = sand.u32 1, %s838_s14  }
   0xb   : > { %s519_s22 = sshll.u32 %s143_s21, 8  ;;  %s536_s23 = sshll.u32 %s842_s15, 12 }
   0xc   : > { %s911_s26 = scalar_lea.hbm %s1112_s1, %s536_s23  ;;  %s145_s27 = scalar_lea.vmem [#allocation6], %s519_s22 }
   0xd   : > { %s152_s28 = sshll.u32 %s145_s27, 4  ;;  %p913_p5 = pnand %p628_p3, %p55_p4  ;;  %s917_s28 = int_to_ptr.vmem [resolvable:$true] %s152_s28 }
   0xe   : > { %s919_s30 = scalar_lea.sflag [#allocation7], %s141_s20  ;;  %s686_s4 = scalar_lea.hbm %s911_s26, 4096 }
   0xf   : > { %s1121_s29 = scalar_select %p913_p5, 1, 0 }
  0x10   : > { %p687_p6 = scmp.ne.s32.totalorder %s911_s26, %s686_s4  ;;  %p1116_p7 = pneg %p913_p5 }
  0x11   : > { %s691_s7 = scalar_lea.hbm %s1112_s1, 16384  ;;  %p692_p10 = scmp.lt.u32.totalorder %s911_s26, %s1112_s1 }
  0x12   : > { %p689_p8 = pnand %p1116_p7, %p687_p6  ;;  %p693_p11 = scmp.lt.u32.totalorder %s691_s7, %s686_s4 }
  0x13   : > { %p695_p13 = scmp.lt.u32.totalorder %s686_s4, %s911_s26 }
  0x14   : > { %p690_p9 = pneg %p689_p8  ;;  %p694_p12 = por %p693_p11, %p692_p10 }
  0x16   : > { %p696_p0 = por %p695_p13, %p694_p12 }
  0x18   : > { %p697_p1 = pnand %p696_p0, %p690_p9 }
  0x1a   : > { %700 = shalt.err (!%p697_p1)
}
  0x1b   : > { %s701_s10 = scalar_lea.vmem %s917_s28, 4096  ;;  %s844_s11 = smov [#allocation6]  }
  0x1c   : > { %p702_p2 = scmp.ne.s32.totalorder %s917_s28, %s701_s10  ;;  %s706_s17 = sshll.u32 %s844_s11, 4  ;;  %s707_s17 = int_to_ptr.vmem [resolvable:$false] %s706_s17 }
  0x1d   : > { %s708_s18 = scalar_lea.vmem %s707_s17, 8192  ;;  %p709_p6 = scmp.lt.s32.totalorder %s917_s28, %s707_s17 }
  0x1e   : > { %p704_p3 = pnand %p702_p2, %p1116_p7  ;;  %p710_p8 = scmp.lt.s32.totalorder %s708_s18, %s701_s10 }
  0x20   : > { %p705_p4 = pneg %p704_p3  ;;  %p711_p10 = por %p710_p8, %p709_p6 }
  0x22   : > { %p712_p11 = pnand %p711_p10, %p705_p4 }
  0x24   : > { %715 = shalt.err (!%p712_p11)
}
  0x25   : > { %s845_s20 = smov 128   ;;  %s846_s22 = smov 8  }
  0x26   : > { %623 = dma.hbm_to_vmem [thread:$0]  (!%p913_p5), %s911_s26, 4096, %s917_s28, %s919_s30, %s845_s20, %s845_s20, %s846_s22  }
  0x27   : > { %s948_s23 = sadd.s32 4294967295, %s842_s15   ;;  %p59_p12 = scmp.ne.s32.totalorder %s834_s13, %s830_s12 }
  0x28   : > { %p1115_p9 = scmp.eq.s32.totalorder %s948_s23, 0  ;;  %p516_p13 = scmp.ge.s32.totalorder %s842_s15, 1 }
  0x29   : > { %p117_p0 = scmp.lt.s32.totalorder %s842_s15, 5  ;;  %s847_s26 = smov [#allocation3]  }
  0x2a   : > { %p957_p1 = por %p1115_p9, %p59_p12  ;;  %s130_s27 = sshll.u32 %s847_s26, 4  ;;  %s131_s27 = int_to_ptr.vmem [resolvable:$true] %s130_s27 }
  0x2b   : > { %p961_p2 = pnand %p516_p13, %p117_p0  ;;  %s522_s28 = sshll.u32 %s143_s21, 1 }
  0x2c   : > { %s1122_s24 = scalar_select %p957_p1, 1, 0 }
  0x2d   : > { %s1123_s25 = scalar_select %p961_p2, 1, 0 }
  0x2e   : > { %p616_p3 = pneg %p961_p2  ;;  %s537_s4 = sshll.u32 %s842_s15, 5 }
  0x2f   : > { %s166_s12 = scalar_lea.vmem [#allocation8], %s522_s28  ;;  %s979_s9 = scalar_lea.hbm %s1113_s2, %s537_s4 }
  0x30   : > { %s174_s5 = sshll.u32 %s166_s12, 4  ;;  %p972_p4 = pnand %p616_p3, %p1115_p9  ;;  %s981_s5 = int_to_ptr.vmem [resolvable:$true] %s174_s5 }
  0x31   : > { %s716_s15 = scalar_lea.hbm %s1111_s0, 128 }
  0x32   : > { %p717_p6 = scmp.ne.s32.totalorder %s1111_s0, %s716_s15  ;;  %p718_p8 = pneg %p972_p4 }
  0x33   : > { %p723_p12 = scmp.lt.u32.totalorder %s716_s15, %s1111_s0 }
  0x34   : > { %p719_p10 = pnand %p718_p8, %p717_p6 }
  0x36   : > { %p720_p11 = pneg %p719_p10 }
  0x38   : > { %p725_p13 = pnand %p723_p12, %p720_p11 }
  0x3a   : > { %728 = shalt.err (!%p725_p13)
}
  0x3b   : > { %s729_s22 = scalar_lea.vmem %s131_s27, 128  ;;  %p737_p7 = scmp.lt.s32.totalorder %s131_s27, %s131_s27 }
  0x3c   : > { %p730_p0 = scmp.ne.s32.totalorder %s131_s27, %s729_s22  ;;  %p738_p1 = scmp.lt.s32.totalorder %s729_s22, %s729_s22 }
  0x3e   : > { %p732_p3 = pnand %p730_p0, %p718_p8  ;;  %p739_p2 = por %p738_p1, %p737_p7 }
  0x40   : > { %p733_p9 = pneg %p732_p3 }
  0x42   : > { %p740_p5 = pnand %p739_p2, %p733_p9 }
  0x44   : > { %743 = shalt.err (!%p740_p5)
}
  0x45   : > { %619 = dma.hbm_to_vmem [thread:$0]  (!%p972_p4), %s1111_s0, 128, %s131_s27, [#allocation4]  }
  0x46   : > { %s744_s4 = scalar_lea.hbm %s979_s9, 32  ;;  %p1125_p8 = scmp.ne.s32.totalorder %s1121_s29, 0 }
  0x47   : > { %p745_p6 = scmp.ne.s32.totalorder %s979_s9, %s744_s4  ;;  %s749_s8 = scalar_lea.hbm %s1113_s2, 128 }
  0x48   : > { %p1126_p10 = pneg %p1125_p8  ;;  %p750_p5 = scmp.lt.u32.totalorder %s979_s9, %s1113_s2 }
  0x49   : > { %p751_p7 = scmp.lt.u32.totalorder %s749_s8, %s744_s4  ;;  %p753_p1 = scmp.lt.u32.totalorder %s744_s4, %s979_s9 }
  0x4a   : > { %p747_p11 = pnand %p745_p6, %p1126_p10 }
  0x4b   : > { %p752_p9 = por %p751_p7, %p750_p5 }
  0x4c   : > { %p748_p12 = pneg %p747_p11 }
  0x4d   : > { %p754_p2 = por %p753_p1, %p752_p9 }
  0x4f   : > { %p755_p13 = pnand %p754_p2, %p748_p12 }
  0x51   : > { %758 = shalt.err (!%p755_p13)
}
  0x52   : > { %s759_s27 = scalar_lea.vmem %s981_s5, 32  ;;  %p1127_p0 = pmov %p1126_p10 }
  0x53   : > { %p760_p4 = scmp.ne.s32.totalorder %s981_s5, %s759_s27  ;;  %s848_s10 = smov [#allocation8]  }
  0x54   : > { %s764_s15 = sshll.u32 %s848_s10, 4  ;;  %s765_s15 = int_to_ptr.vmem [resolvable:$false] %s764_s15 }
  0x55   : > { %p762_p3 = pnand %p760_p4, %p1127_p0  ;;  %s766_s11 = scalar_lea.vmem %s765_s15, 64 }
  0x56   : > { %p767_p10 = scmp.lt.s32.totalorder %s981_s5, %s765_s15  ;;  %p768_p11 = scmp.lt.s32.totalorder %s766_s11, %s759_s27 }
  0x57   : > { %p763_p6 = pneg %p762_p3 }
  0x58   : > { %p769_p5 = por %p768_p11, %p767_p10 }
  0x5a   : > { %p770_p7 = pnand %p769_p5, %p763_p6 }
  0x5c   : > { %773 = shalt.err (!%p770_p7)
}
  0x5d   : > { %626 = dma.hbm_to_vmem [thread:$0]  (!%p1125_p8), %s979_s9, 32, %s981_s5, %s919_s30  }
  0x5e   : > { %p1128_p12 = scmp.ne.s32.totalorder %s1123_s25, 0 }
  0x5f   : > { %p1129_p9 = scmp.eq.s32.totalorder (!%p1128_p12), %s948_s23, 0 }
  0x60   : > { %183 = sbr.rel (%p1128_p12) target bundleno = 769 (0x301), region = 32 }
  0x67   : > { %817 = dma.done.wait (%p1129_p9), [#allocation4], 128   ;;  %p1130_p1 = pmov %p1129_p9 }
  0x68   : > { %s189_s17 = sand.u32 1, %s948_s23   ;;  %s191_s18 = sand.u32 1, %s834_s13  }
  0x69   : > { %819 = vsyncadd (%p1130_p1), [#allocation4], 4294967168  ;;  %s527_s29 = sshll.u32 %s191_s18, 8  ;;  %s190_s20 = scalar_lea.sflag [#allocation7], %s189_s17 }
  0x6a   : > { %s1033_s22 = scalar_lea.vmem [#allocation6], %s527_s29  ;;  %p1131_p8 = scmp.ne.s32.totalorder %s1122_s24, 0 }
  0x6c   : > { %821 = dma.done.wait (%p1131_p8), %s190_s20, 4128  }
  0x6d   : > { %823 = vsyncadd (%p1131_p8), %s190_s20, 4294963168  ;;  %v244_v0 = vld [vmem:[%s1033_s22 + $0x80] sm:$0xff]  ;;  %v245_v1 = vld [vmem:[%s1033_s22 + $0x88] sm:$0xff]  ;;  %v262_v49 = vlaneseq  ;;  %s528_s30 = sshll.u32 %s191_s18, 1  ;;  %s529_s24 = sshll.u32 %s948_s23, 8 }
  0x6e   : > { %v228_v2 = vld [vmem:[%s1033_s22] sm:$0xff]  ;;  %v572_v3 = vpack.c.bf16 %v245_v1, %v244_v0  ;;  %v229_v4 = vld [vmem:[%s1033_s22 + $0x8] sm:$0xff]  ;;  %v246_v5 = vld [vmem:[%s1033_s22 + $0x90] sm:$0xff]  ;;  %s202_s25 = scalar_lea.vmem [#allocation8], %s528_s30  ;;  %s344_s5 = sshra.s32 %s529_s24, 7 }
  0x6f   : > { %v247_v6 = vld [vmem:[%s1033_s22 + $0x98] sm:$0xff]  ;;  %v574_v7 = vpack.c.bf16 %v229_v4, %v228_v2  ;;  %v230_v9 = vld [vmem:[%s1033_s22 + $0x10] sm:$0xff]  ;;  %v248_v11 = vld [vmem:[%s1033_s22 + $0xa0] sm:$0xff]  ;;  %v263_v50 = vshrl.u32 %v262_v49, 7  ;;  %s530_s9 = sshll.u32 %s344_s5, 3  ;;  %p531_p2 = scmp.ne.s32.totalorder %s948_s23, 3 }
  0x70   : > { %v576_v8 = vpack.c.bf16 %v247_v6, %v246_v5  ;;  %573 = vmatprep.subr.bf16.mxu0 %v572_v3  ;;  %v231_v10 = vld [vmem:[%s1033_s22 + $0x18] sm:$0xff]  ;;  %v249_v12 = vld [vmem:[%s1033_s22 + $0xa8] sm:$0xff]  ;;  %v232_v16 = vld [vmem:[%s1033_s22 + $0x20] sm:$0xff]  ;;  %s347_s26 = scalar_lea.vmem [#allocation2], %s530_s9 }
  0x71   : > { %575 = vmatpush3.bf16.xpose.msra.mxu0 %v574_v7  ;;  %v578_v13 = vpack.c.bf16 %v231_v10, %v230_v9  ;;  %v580_v14 = vpack.c.bf16 %v249_v12, %v248_v11  ;;  %v227_v15 = vld [vmem:[#allocation3] sm:$0xff]  ;;  %v233_v17 = vld [vmem:[%s1033_s22 + $0x28] sm:$0xff]  ;;  %v250_v18 = vld [vmem:[%s1033_s22 + $0xb0] sm:$0xff]  ;;  %v264_v51 = vsub.s32 0, %v263_v50  ;;  %v268_v53 = vsub.s32 1, %v263_v50 }
  0x72   : > { %577 = vmatprep.subr.bf16.mxu0 %v576_v8  ;;  %570 = vmatprep.mubr.f32.mxu0 %v227_v15  ;;  %v251_v19 = vld [vmem:[%s1033_s22 + $0xb8] sm:$0xff]  ;;  %v582_v20 = vpack.c.bf16 %v233_v17, %v232_v16  ;;  %v234_v22 = vld [vmem:[%s1033_s22 + $0x30] sm:$0xff]  ;;  %v252_v24 = vld [vmem:[%s1033_s22 + $0xc0] sm:$0xff] }
  0x73   : > { %v584_v21 = vpack.c.bf16 %v251_v19, %v250_v18  ;;  %v235_v23 = vld [vmem:[%s1033_s22 + $0x38] sm:$0xff]  ;;  %v253_v25 = vld [vmem:[%s1033_s22 + $0xc8] sm:$0xff]  ;;  %v236_v28 = vld [vmem:[%s1033_s22 + $0x40] sm:$0xff] }
  0x74   : > { %v586_v26 = vpack.c.bf16 %v235_v23, %v234_v22  ;;  %v588_v27 = vpack.c.bf16 %v253_v25, %v252_v24  ;;  %v237_v29 = vld [vmem:[%s1033_s22 + $0x48] sm:$0xff]  ;;  %v254_v30 = vld [vmem:[%s1033_s22 + $0xd0] sm:$0xff]  ;;  %v255_v31 = vld [vmem:[%s1033_s22 + $0xd8] sm:$0xff] }
  0x75   : > { %v590_v32 = vpack.c.bf16 %v237_v29, %v236_v28  ;;  %v592_v33 = vpack.c.bf16 %v255_v31, %v254_v30  ;;  %v238_v34 = vld [vmem:[%s1033_s22 + $0x50] sm:$0xff]  ;;  %v239_v35 = vld [vmem:[%s1033_s22 + $0x58] sm:$0xff]  ;;  %v256_v36 = vld [vmem:[%s1033_s22 + $0xe0] sm:$0xff] }
  0x76   : > { %v257_v37 = vld [vmem:[%s1033_s22 + $0xe8] sm:$0xff]  ;;  %v594_v38 = vpack.c.bf16 %v239_v35, %v238_v34  ;;  %v240_v40 = vld [vmem:[%s1033_s22 + $0x60] sm:$0xff]  ;;  %v258_v42 = vld [vmem:[%s1033_s22 + $0xf0] sm:$0xff] }
  0x77   : > { %v596_v39 = vpack.c.bf16 %v257_v37, %v256_v36  ;;  %v241_v41 = vld [vmem:[%s1033_s22 + $0x68] sm:$0xff]  ;;  %v259_v43 = vld [vmem:[%s1033_s22 + $0xf8] sm:$0xff]  ;;  %v242_v46 = vld [vmem:[%s1033_s22 + $0x70] sm:$0xff] }
  0x78   : > { %v598_v44 = vpack.c.bf16 %v241_v41, %v240_v40  ;;  %v600_v45 = vpack.c.bf16 %v259_v43, %v258_v42  ;;  %v243_v47 = vld [vmem:[%s1033_s22 + $0x78] sm:$0xff]  ;;  %v260_v52 = vld [vmem:[%s202_s25] sm:$0x3] }
  0x79   : > { %579 = vmatpush3.bf16.xpose.msra.mxu0 %v578_v13  ;;  %v602_v48 = vpack.c.bf16 %v243_v47, %v242_v46  ;;  %v265_v54 = vrot.slane %v260_v52, %v264_v51  ;;  %v269_v55 = vrot.slane %v260_v52, %v268_v53 }
  0x7a   : > { %581 = vmatprep.subr.bf16.mxu0 %v580_v14 }
  0x81   : > { %583 = vmatpush3.bf16.xpose.msra.mxu0 %v582_v20 }
  0x82   : > { %585 = vmatprep.subr.bf16.mxu0 %v584_v21 }
  0x89   : > { %587 = vmatpush3.bf16.xpose.msra.mxu0 %v586_v26 }
  0x8a   : > { %589 = vmatprep.subr.bf16.mxu0 %v588_v27 }
  0x91   : > { %591 = vmatpush3.bf16.xpose.msra.mxu0 %v590_v32 }
  0x92   : > { %593 = vmatprep.subr.bf16.mxu0 %v592_v33 }
  0x99   : > { %595 = vmatpush3.bf16.xpose.msra.mxu0 %v594_v38 }
  0x9a   : > { %597 = vmatprep.subr.bf16.mxu0 %v596_v39 }
  0xa1   : > { %599 = vmatpush3.bf16.xpose.msra.mxu0 %v598_v44 }
  0xa2   : > { %601 = vmatprep.subr.bf16.mxu0 %v600_v45 }
  0xa9   : > { %603 = vmatpush3.bf16.xpose.msra.mxu0 %v602_v48 }
  0xb0   : > { %571 = vmatmul.mubr.f32.vlgmr.msra.gmra.mrb[0].mxu0 %v227_v15 }
 0x181   : > { %353 = sbr.rel (%p531_p2) target bundleno = 744 (0x2e8), region = 48 }
 0x183   : > { %v338_v56 = vpop.f32.mrb[0].mxu0 }
 0x184   : > { %v339_v57 = vadd.f32 %v338_v56, %v265_v54  ;;  %v340_v58 = vpop.f32.mrb[1].mxu0 }
 0x185   : > { %v341_v59 = vadd.f32 %v340_v58, %v269_v55 }
 0x186   : > { %348 = vst [vmem:[%s347_s26] sm:$0xff] %v339_v57 }
 0x187   : > { %349 = vst [vmem:[%s347_s26 + $0x8] sm:$0xff] %v341_v59 }
 0x18e   : > { %v354_v60 = vld [vmem:[#allocation2] sm:$0xff]  ;;  %v355_v61 = vld [vmem:[#allocation2 + $0x8] sm:$0xff]  ;;  %v356_v62 = vld [vmem:[#allocation2 + $0x10] sm:$0xff] }
 0x18f   : > { %v357_v63 = vld [vmem:[#allocation2 + $0x18] sm:$0xff]  ;;  %v358_v0 = vld [vmem:[#allocation2 + $0x20] sm:$0xff]  ;;  %v359_v1 = vld [vmem:[#allocation2 + $0x28] sm:$0xff] }
 0x190   : > { %v360_v2 = vld [vmem:[#allocation2 + $0x30] sm:$0xff]  ;;  %v361_v3 = vld [vmem:[#allocation2 + $0x38] sm:$0xff]  ;;  %v362_v4 = vmax.f32 %v354_v60, %v358_v0  ;;  %v363_v5 = vmax.f32 %v355_v61, %v359_v1 }
 0x191   : > { %v364_v6 = vmax.f32 %v356_v62, %v360_v2  ;;  %v365_v7 = vmax.f32 %v357_v63, %v361_v3 }
 0x192   : > { %v366_v8 = vmax.f32 %v362_v4, %v363_v5 }
 0x193   : > { %v367_v9 = vmax.f32 %v364_v6, %v365_v7 }
 0x195   : > { %v368_v10 = vmax.f32 %v366_v8, %v367_v9 }
 0x197   : > { %369 = vmax.xlane.f32.xlu0 %v368_v10 }
 0x224   : > { %v370_v11 = vpop.xlane.xlu0 %369 }
 0x225   : > { %v371_v12 = vsub.f32 %v354_v60, %v370_v11  ;;  %v372_v13 = vsub.f32 %v355_v61, %v370_v11  ;;  %v373_v14 = vsub.f32 %v356_v62, %v370_v11  ;;  %v374_v15 = vsub.f32 %v357_v63, %v370_v11 }
 0x226   : > { %v375_v19 = vsub.f32 %v358_v0, %v370_v11  ;;  %v376_v21 = vsub.f32 %v359_v1, %v370_v11  ;;  %v377_v22 = vsub.f32 %v360_v2, %v370_v11  ;;  %v378_v24 = vsub.f32 %v361_v3, %v370_v11 }
 0x227   : > { %v379_v16 = vmul.f32 1.442695, %v371_v12  ;;  %v381_v17 = vmul.f32 1.442695, %v372_v13  ;;  %v383_v18 = vmul.f32 1.442695, %v373_v14 }
 0x228   : > { %v385_v20 = vmul.f32 1.442695, %v374_v15  ;;  %v387_v23 = vmul.f32 1.442695, %v375_v19  ;;  %v389_v25 = vmul.f32 1.442695, %v376_v21 }
 0x229   : > { %668 = vpow2.f32 %v379_v16  ;;  %v391_v26 = vmul.f32 1.442695, %v377_v22  ;;  %v393_v27 = vmul.f32 1.442695, %v378_v24 }
 0x22a   : > { %670 = vpow2.f32 %v381_v17 }
 0x22b   : > { %672 = vpow2.f32 %v383_v18 }
 0x22c   : > { %674 = vpow2.f32 %v385_v20 }
 0x22d   : > { %676 = vpow2.f32 %v387_v23 }
 0x22e   : > { %678 = vpow2.f32 %v389_v25 }
 0x22f   : > { %680 = vpow2.f32 %v391_v26 }
 0x230   : > { %682 = vpow2.f32 %v393_v27 }
 0x233   : > { %v669_v28 = vpop.eup %668 }
 0x234   : > { %v671_v29 = vpop.eup %670 }
 0x235   : > { %v395_v30 = vadd.f32 %v671_v29, %v669_v28  ;;  %v673_v31 = vpop.eup %672 }
 0x236   : > { %v675_v33 = vpop.eup %674 }
 0x237   : > { %v396_v32 = vadd.f32 %v673_v31, %v395_v30  ;;  %v677_v35 = vpop.eup %676 }
 0x238   : > { %v679_v37 = vpop.eup %678 }
 0x239   : > { %v397_v34 = vadd.f32 %v675_v33, %v396_v32  ;;  %v681_v39 = vpop.eup %680 }
 0x23a   : > { %v683_v41 = vpop.eup %682 }
 0x23b   : > { %v398_v36 = vadd.f32 %v677_v35, %v397_v34 }
 0x23d   : > { %v399_v38 = vadd.f32 %v679_v37, %v398_v36 }
 0x23f   : > { %v400_v40 = vadd.f32 %v681_v39, %v399_v38 }
 0x241   : > { %v401_v42 = vadd.f32 %v683_v41, %v400_v40 }
 0x243   : > { %402 = vadd.xlane.f32.xlu0 %v401_v42 }
 0x2d0   : > { %v403_v43 = vpop.xlane.xlu0 %402 }
 0x2d1   : > { %684 = vrcp.f32 %v403_v43 }
 0x2db   : > { %v685_v44 = vpop.eup %684 }
 0x2dc   : > { %v405_v45 = vmul.f32 %v685_v44, %v403_v43 }
 0x2de   : > { %v406_v46 = vsub.f32 2.0, %v405_v45 }
 0x2e0   : > { %v407_v47 = vmul.f32 %v685_v44, %v406_v46 }
 0x2e2   : > { %v408_v48 = vmul.f32 %v669_v28, %v407_v47  ;;  %v409_v49 = vmul.f32 %v671_v29, %v407_v47  ;;  %v410_v50 = vmul.f32 %v673_v31, %v407_v47  ;;  %v411_v51 = vmul.f32 %v675_v33, %v407_v47 }
 0x2e3   : > { %v412_v52 = vmul.f32 %v677_v35, %v407_v47  ;;  %v413_v53 = vmul.f32 %v679_v37, %v407_v47  ;;  %v414_v54 = vmul.f32 %v681_v39, %v407_v47  ;;  %v415_v55 = vmul.f32 %v683_v41, %v407_v47 }
 0x2e4   : > { %416 = vst [vmem:[#allocation9] sm:$0xff] %v408_v48  ;;  %417 = vst [vmem:[#allocation9 + $0x8] sm:$0xff] %v409_v49 }
 0x2e5   : > { %418 = vst [vmem:[#allocation9 + $0x10] sm:$0xff] %v410_v50  ;;  %419 = vst [vmem:[#allocation9 + $0x18] sm:$0xff] %v411_v51 }
 0x2e6   : > { %420 = vst [vmem:[#allocation9 + $0x20] sm:$0xff] %v412_v52  ;;  %421 = vst [vmem:[#allocation9 + $0x28] sm:$0xff] %v413_v53 }
 0x2e7   : > { %422 = vst [vmem:[#allocation9 + $0x30] sm:$0xff] %v414_v54  ;;  %423 = vst [vmem:[#allocation9 + $0x38] sm:$0xff] %v415_v55 }
 0x2e8 PF: > { %p630_p13 = scmp.eq.s32.totalorder %s948_s23, 3  ;;  %s849_s28 = smov [#allocation9]  }
 0x2e9   : > { %s431_s4 = sshll.u32 %s849_s28, 4  ;;  %s432_s4 = int_to_ptr.vmem [resolvable:$true] %s431_s4 }
 0x2ea   : > { %s774_s12 = scalar_lea.vmem %s432_s4, 1024  ;;  %p781_p6 = scmp.lt.s32.totalorder %s432_s4, %s432_s4 }
 0x2eb   : > { %p775_p4 = scmp.ne.s32.totalorder %s432_s4, %s774_s12  ;;  %p782_p10 = scmp.lt.s32.totalorder %s774_s12, %s774_s12 }
 0x2ed   : > { %p776_p0 = pnand %p775_p4, %p630_p13  ;;  %p783_p11 = por %p782_p10, %p781_p6 }
 0x2ef   : > { %p777_p3 = pneg %p776_p0 }
 0x2f1   : > { %p784_p5 = pnand %p783_p11, %p777_p3 }
 0x2f3   : > { %787 = shalt.err (!%p784_p5)
}
 0x2f4   : > { %s788_s6 = scalar_lea.hbm %s1114_s3, 1024 }
 0x2f5   : > { %p789_p7 = scmp.ne.s32.totalorder %s1114_s3, %s788_s6  ;;  %p794_p1 = scmp.lt.u32.totalorder %s788_s6, %s1114_s3 }
 0x2f7   : > { %p790_p12 = pnand %p789_p7, %p630_p13 }
 0x2f9   : > { %p791_p9 = pneg %p790_p12 }
 0x2fb   : > { %p796_p8 = pnand %p794_p1, %p791_p9 }
 0x2fd   : > { %799 = shalt.err (!%p796_p8)
}
 0x2fe   : > { %613 = dma.vmem_to_hbm [thread:$0]  (%p630_p13), %s432_s4, 1024, %s1114_s3, [#allocation5]  }
 0x2ff   : > { %825 = dma.done.wait (%p630_p13), [#allocation5], 1024  }
 0x300   : > { %827 = vsyncadd (%p630_p13), [#allocation5], 4294966272 }
 0x301 PF: > { %p15_p2 = scmp.ge.s32.totalorder %s891_s16, 6   ;;  %s1132_s12 = smov %s834_s13 }
 0x302   : > { %s1133_s13 = smov %s838_s14  ;;  %s1134_s14 = smov %s901_s19 }
 0x303   : > { %s1135_s15 = smov %s891_s16  ;;  %17 = sbr.rel (!%p15_p2) target bundleno = 5 (0x5), region = 90 }
 0x30a   :  { %444 = vsyncpa [#allocation4], 1 }
 0x30b   :  { %446 = vsyncpa [#allocation4 + $0x1], 1 }
 0x30c   :  { %447 = vsyncpa [#allocation7], 1 }
 0x30d   :  { %449 = vsyncpa [#allocation7 + $0x1], 1 }
 0x30e   :  { %450 = vsyncpa [#allocation5], 1 }
 0x30f   :  { %452 = vsyncpa [#allocation5 + $0x1], 1 }

</bundles_post_ra>
